<compile_context>
chip_gen: v7x
topology: tpu7x:2x2x1
jax: 0.10.0
libtpu: 0.0.40
codegen_flags: <defaults>
</compile_context>

<pallas_src>
import functools

import numpy as np

import jax
import jax.numpy as jnp
from jax.experimental import pallas as pl
from jax.experimental.pallas import tpu as pltpu


def _round_up(x, m):
    return ((x + m - 1) // m) * m


def _cdiv(a, b):
    return -(-a // b)


def _proj_kernel(x_ref, w_ref, b_ref, o_ref):
    # x_ref: (TM, K)  bf16 patch tile (streamed along the M grid axis)
    # w_ref: (K, TN)  bf16 projection weight (VMEM-resident when TN == hidden_pad)
    # b_ref: (1, TN)  f32 bias
    # o_ref: (TM, TN) output tile -- lane-dense (TN % 128 == 0), bf16 by default
    acc = jnp.dot(x_ref[...], w_ref[...], preferred_element_type=jnp.float32)
    o_ref[...] = (acc + b_ref[...]).astype(o_ref.dtype)


def _vmem_budgets():
    """(tile budget, vmem_limit_bytes), generation aware with a safe fallback."""
    try:
        cap = int(pltpu.get_tpu_info().vmem_capacity_bytes)
    except Exception:
        cap = 64 * 1024 * 1024          # assume the smallest part (v7x, 64 MiB)
    if cap >= 100 * 1024 * 1024:        # v5e / v6e: 128 MiB physical VMEM
        return 80 * 1024 * 1024, 100 * 1024 * 1024
    return 28 * 1024 * 1024, 48 * 1024 * 1024   # v7x: 64 MiB physical VMEM


def _choose_tile_m(K, tn, in_itemsize, out_itemsize, budget_bytes, resident_bytes):
    """Largest MXU-granule TM whose double-buffered LHS/out tiles fit the budget."""
    per_row = 2 * (K * in_itemsize + tn * out_itemsize)   # 2x-buffered LHS + out row
    avail = max(budget_bytes - resident_bytes, per_row * 16)
    tm = min(avail // per_row, 1024)
    if tm >= 256:
        return (tm // 256) * 256        # MXU-friendly on v6e/v7x (also a 128-multiple)
    if tm >= 128:
        return 128                      # v5e MXU granule
    return max((tm // 16) * 16, 16)     # bf16 sublane-packing granule


def _plan_m(M, tm_cap):
    """Pick (tm, m_pad, n_m); guarantee >= 2 grid steps when there is enough work
    so the 'parallel' M axis can be sharded across v7x's two TensorCores."""
    if M <= tm_cap:
        if M >= 32:                     # enough rows to split across two cores
            half = _cdiv(M, 2)
            g = 256 if half >= 256 else (128 if half >= 128 else 16)
            tm = min(_round_up(half, g), tm_cap)
        else:
            tm = _round_up(M, 8)        # single tile == full (padded) M dim
    else:
        tm = tm_cap
    n_m = _cdiv(M, tm)
    return tm, n_m * tm, n_m


def patch_embed(x, weight, bias, patch_size, *,
                compute_dtype=jnp.bfloat16, out_dtype=None):
    """Forward pass of PatchEmbed (Conv2d(k=s=p) + flatten(2) + transpose(1, 2)).

    Args:
      x:          (B, C, H, W) image, NCHW (PyTorch convention).
      weight:     (hidden, C, p, p) Conv2d weight (OIHW).
      bias:       (hidden,) Conv2d bias.
      patch_size: int p; kernel_size == stride == p.
      compute_dtype: MXU operand dtype (bf16; accumulation is always f32).
      out_dtype:  output dtype; defaults to compute_dtype (bf16 writeback, per the
                  perf review).  Pass jnp.float32 for exact module dtype parity.

    Returns:
      (B, num_patches, hidden) with num_patches = (H//p) * (W//p).
    """
    if out_dtype is None:
        out_dtype = compute_dtype
    B, C, H, W = x.shape
    p = patch_size
    hidden = weight.shape[0]
    assert H % p == 0 and W % p == 0, "image size must match patch grid"
    hp, wp = H // p, W // p
    num_patches = hp * wp

    # ---- patch extraction (wrapper-side, one XLA transpose).  The NCHW ->
    # patch-major permutation is a lane->sublane shuffle, so it cannot be a free
    # reshape; the intermediate is written directly in bf16 to halve its HBM cost.
    # TODO(synk): in-kernel patchify would remove this HBM round trip (see header).
    patches = x.reshape(B, C, hp, p, wp, p)
    patches = patches.transpose(0, 2, 4, 1, 3, 5)
    patches = patches.reshape(B * num_patches, C * p * p).astype(compute_dtype)

    M, K = patches.shape
    in_itemsize = np.dtype(compute_dtype).itemsize
    out_itemsize = np.dtype(out_dtype).itemsize

    # ---- weight / bias: (hidden, C, p, p) -> (K, hidden); pad hidden to a
    # multiple of 128 so output stores are unmasked, full-lane vst.
    hidden_pad = _round_up(hidden, 128)
    w_mat = weight.reshape(hidden, K).T.astype(compute_dtype)
    b_vec = bias.astype(jnp.float32)
    if hidden_pad != hidden:
        w_mat = jnp.pad(w_mat, ((0, 0), (0, hidden_pad - hidden)))
        b_vec = jnp.pad(b_vec, (0, hidden_pad - hidden))
    b_mat = b_vec.reshape(1, hidden_pad)

    budget, vmem_limit = _vmem_budgets()

    # ---- N (hidden) tiling.  K = C*p*p and hidden are small for patch embeds, so
    # the whole (K, hidden_pad) weight normally stays VMEM-resident (n_n == 1);
    # the streamed fallback only exists for pathologically wide projections.
    resident_bytes = 2 * (K * hidden_pad * in_itemsize + hidden_pad * 4)
    if resident_bytes <= budget // 4:
        tn, n_n = hidden_pad, 1
        # Grid-invariant weight/bias: single-buffer them when big enough to matter
        # inside v7x's 64-MiB VMEM (never triggers for typical ViT shapes).
        single_buffer_wb = (K * hidden_pad * in_itemsize) > (4 * 1024 * 1024)
        if single_buffer_wb:
            resident_bytes //= 2
    else:
        tn = 512 if hidden_pad % 512 == 0 else 128
        n_n = hidden_pad // tn
        single_buffer_wb = False
        resident_bytes = 2 * (K * tn * in_itemsize + tn * 4)

    # ---- M tiling ----
    tm_cap = _choose_tile_m(K, tn, in_itemsize, out_itemsize, budget, resident_bytes)
    tm, m_pad, n_m = _plan_m(M, tm_cap)
    if m_pad != M:
        patches = jnp.pad(patches, ((0, m_pad - M), (0, 0)))

    def _resident_spec(shape, index_map):
        # Weight/bias are grid-invariant when n_n == 1; single-buffer them on the
        # VMEM-tight path only (keeps the default, well-tested path otherwise).
        if single_buffer_wb:
            return pl.BlockSpec(shape, index_map, pipeline_mode=pl.Buffered(1))
        return pl.BlockSpec(shape, index_map)

    cost = pl.CostEstimate(
        flops=2 * m_pad * K * hidden_pad,
        transcendentals=0,
        bytes_accessed=(m_pad * K * in_itemsize          # streamed patches
                        + K * hidden_pad * in_itemsize   # resident weight
                        + hidden_pad * 4                 # bias
                        + m_pad * hidden_pad * out_itemsize),  # output writeback
    )

    out = pl.pallas_call(
        _proj_kernel,
        out_shape=jax.ShapeDtypeStruct((m_pad, hidden_pad), out_dtype),
        grid_spec=pl.GridSpec(
            grid=(n_m, n_n),
            in_specs=[
                pl.BlockSpec((tm, K), lambda i, j: (i, 0)),      # streamed LHS
                _resident_spec((K, tn), lambda i, j: (0, j)),    # weight
                _resident_spec((1, tn), lambda i, j: (0, j)),    # bias
            ],
            out_specs=pl.BlockSpec((tm, tn), lambda i, j: (i, j)),
        ),
        compiler_params=pltpu.CompilerParams(
            dimension_semantics=("parallel", "parallel"),  # shard M (and N) tiles
            vmem_limit_bytes=vmem_limit,
        ),
        cost_estimate=cost,
    )(patches, w_mat, b_mat)

    if m_pad != M or hidden_pad != hidden:
        out = out[:M, :hidden]
    return out.reshape(B, num_patches, hidden)


if __name__ == "__main__":
    # Small shapes consistent with the module: img_size=16, patch_size=4,
    # input_dim=4, hidden_dim=32, batch=2.
    B, C, H, W = 2, 4, 16, 16
    patch_size = 4
    hidden_dim = 32

    key = jax.random.PRNGKey(0)
    kx, kw, kb = jax.random.split(key, 3)

    x = jax.random.normal(kx, (B, C, H, W), dtype=jnp.float32)
    fan_in = C * patch_size * patch_size
    weight = jax.random.normal(
        kw, (hidden_dim, C, patch_size, patch_size), dtype=jnp.float32
    ) * (1.0 / jnp.sqrt(fan_in))
    bias = jax.random.normal(kb, (hidden_dim,), dtype=jnp.float32) * 0.01

    fn = jax.jit(functools.partial(patch_embed, patch_size=patch_size))
    out = jax.block_until_ready(fn(x, weight, bias))

    def conv_ref(xx, ww):
        y = jax.lax.conv_general_dilated(
            xx, ww,
            window_strides=(patch_size, patch_size),
            padding="VALID",
            dimension_numbers=("NCHW", "OIHW", "NCHW"),
        ) + bias.reshape(1, hidden_dim, 1, 1)
        return y.reshape(B, hidden_dim, -1).transpose(0, 2, 1)

    # Reference 1: PyTorch-semantics f32 conv.
    ref_f32 = conv_ref(x, weight)
    # Reference 2: same math as the kernel (bf16-rounded operands, f32 accumulate).
    ref_bf = conv_ref(x.astype(jnp.bfloat16).astype(jnp.float32),
                      weight.astype(jnp.bfloat16).astype(jnp.float32))

    out_f32 = out.astype(jnp.float32)
    assert out.shape == (B, (H // patch_size) * (W // patch_size), hidden_dim)
    assert out.dtype == jnp.bfloat16   # bf16 writeback (perf review item 2)
    assert jnp.allclose(out_f32, ref_bf, atol=3e-2, rtol=3e-2), "kernel-math mismatch"
    assert jnp.allclose(out_f32, ref_f32, atol=8e-2, rtol=8e-2), "f32 reference mismatch"
    print("KERNEL_OK")
</pallas_src>

<mosaic_0001>
module attributes {stable_mosaic.version = 11 : i64} {
  func.func @_proj_kernel(%arg0: i32, %arg1: i32, %arg2: memref<16x64xbf16, #tpu.memory_space<vmem>>, %arg3: memref<64x128xbf16, #tpu.memory_space<vmem>>, %arg4: memref<1x128xf32, #tpu.memory_space<vmem>>, %arg5: memref<16x128xbf16, #tpu.memory_space<vmem>>) attributes {dimension_semantics = [#tpu.dimension_semantics<parallel>, #tpu.dimension_semantics<parallel>], iteration_bounds = array<i64: 2, 1>, scalar_prefetch = 0 : i64, scratch_operands = 0 : i64, tpu.core_type = #tpu.core_type<tc>, window_params = [{transform_indices = @transform_0, window_bounds = array<i64: 16, 64>}, {transform_indices = @transform_1, window_bounds = array<i64: 64, 128>}, {transform_indices = @transform_2, window_bounds = array<i64: 1, 128>}, {transform_indices = @transform_3, window_bounds = array<i64: 16, 128>}]} {
    %c0 = arith.constant 0 : index
    %c0_0 = arith.constant 0 : index
    %0 = vector.load %arg2[%c0, %c0_0] : memref<16x64xbf16, #tpu.memory_space<vmem>>, vector<16x64xbf16>
    %c0_1 = arith.constant 0 : index
    %c0_2 = arith.constant 0 : index
    %1 = vector.load %arg3[%c0_1, %c0_2] : memref<64x128xbf16, #tpu.memory_space<vmem>>, vector<64x128xbf16>
    %cst = arith.constant dense<0.000000e+00> : vector<16x128xf32>
    %2 = tpu.matmul %0, %1, %cst {dimension_numbers = #tpu.dot_dimension_numbers<[1], [0], [0], [1], [0, 0, 1, 1], [], []>} : vector<16x64xbf16>, vector<64x128xbf16>, vector<16x128xf32> -> vector<16x128xf32>
    %c0_3 = arith.constant 0 : index
    %c0_4 = arith.constant 0 : index
    %3 = vector.load %arg4[%c0_3, %c0_4] : memref<1x128xf32, #tpu.memory_space<vmem>>, vector<1x128xf32>
    %4 = vector.broadcast %3 : vector<1x128xf32> to vector<16x128xf32>
    %5 = arith.addf %2, %4 : vector<16x128xf32>
    %6 = arith.truncf %5 : vector<16x128xf32> to vector<16x128xbf16>
    %c0_5 = arith.constant 0 : index
    %c0_6 = arith.constant 0 : index
    %7 = vector.load %arg5[%c0_5, %c0_6] : memref<16x128xbf16, #tpu.memory_space<vmem>>, vector<16x128xbf16>
    tpu.vector_store %arg5[%c0_5, %c0_6], %6 {strides = array<i32>} : memref<16x128xbf16, #tpu.memory_space<vmem>>, vector<16x128xbf16>,
    return
  }
  func.func @transform_0(%arg0: i32, %arg1: i32) -> (i32, i32) {
    %c0_i32 = arith.constant 0 : i32
    %c0_i32_0 = arith.constant 0 : i32
    return %arg0, %c0_i32 : i32, i32
  }
  func.func @transform_1(%arg0: i32, %arg1: i32) -> (i32, i32) {
    %c0_i32 = arith.constant 0 : i32
    %c0_i32_0 = arith.constant 0 : i32
    return %c0_i32, %arg1 : i32, i32
  }
  func.func @transform_2(%arg0: i32, %arg1: i32) -> (i32, i32) {
    %c0_i32 = arith.constant 0 : i32
    %c0_i32_0 = arith.constant 0 : i32
    return %c0_i32, %arg1 : i32, i32
  }
  func.func @transform_3(%arg0: i32, %arg1: i32) -> (i32, i32) {
    %c0_i32 = arith.constant 0 : i32
    return %arg0, %arg1 : i32, i32
  }
}

</mosaic_0001>

<bundles_post_ra>
// kernel: patch_embed.1
= control target key start
LH: loop header
LB: loop body
LE: loop exit
PB: predicated region body
PF: predicated region fallthrough
CT: control target
= control target key end

     0   :  { %8 = vsyncpa [#allocation3], 0  ;;  %s780_s0 = inlined_call_operand.vmem [shape: bf16[32,64], index: 0, kind: input, shape index: {}]   ;;  %s781_s1 = inlined_call_operand.vmem [shape: bf16[64,128], index: 1, kind: input, shape index: {}]   ;;  %s782_s2 = inlined_call_operand.vmem [shape: f32[1,128], index: 2, kind: input, shape index: {}]   ;;  %s783_s3 = inlined_call_operand.hbm [shape: bf16[32,128], index: 3, kind: output, shape index: {}]  }
   0x1   :  { %10 = vsyncpa [#allocation3 + $0x1], 0  ;;  %s651_s12 = smov 0   ;;  %s653_s13 = smov 0  }
   0x2   :  { %s655_s14 = smov 0   ;;  %s657_s15 = smov 0  }
   0x3   :  { %s659_s16 = smov 0   ;;  %s661_s17 = smov 0  }
   0x4 LB: > { %s433_s18 = sadd.s32 4294967295, %s624_s17   ;;  %s434_s19 = sadd.s32 4294967294, %s624_s17   ;;  %s624_s17 = sphi %s661_s17, %s16_s17   ;;  %s620_s16 = sphi %s659_s16, %s790_s16   ;;  %s616_s15 = sphi %s657_s15, %s789_s15   ;;  %s612_s14 = sphi %s655_s14, %s788_s14   ;;  %s608_s13 = sphi %s653_s13, %s787_s13   ;;  %s604_s12 = sphi %s651_s12, %s786_s12  }
   0x5   : > { %s28_s20 = sadd.s32 1, %s620_s16  ;;  %s115_s21 = sadd.s32 1, %s612_s14 }
   0x6   : > { %p30_p0 = scmp.ge.s32.totalorder %s28_s20, 2  ;;  %p125_p1 = scmp.ne.s32.totalorder %s612_s14, %s608_s13 }
   0x7   : > { %p126_p2 = scmp.eq.s32.totalorder %s433_s18, 1  ;;  %p131_p3 = scmp.ne.s32.totalorder %s608_s13, %s604_s12 }
   0x8   : > { %s792_s20 = smov (%p30_p0, %s28_s20), 0  ;;  %p132_p5 = scmp.eq.s32.totalorder %s434_s19, 1 }
   0x9   : > { %p691_p4 = por %p126_p2, %p125_p1  ;;  %s110_s23 = ssub.s32 %s620_s16, %s792_s20 }
   0xa   : > { %p439_p6 = scmp.ge.s32.totalorder %s624_s17, 1  ;;  %p113_p7 = scmp.eq.s32.totalorder %s110_s23, 0 }
   0xb   : > { %p698_p8 = por %p132_p5, %p131_p3  ;;  %p172_p9 = scmp.lt.s32.totalorder %s624_s17, 3 }
   0xc   : > { %s704_s25 = scalar_select %p113_p7, %s612_s14, %s115_s21  }
   0xd   : > { %p173_p10 = pnand %p439_p6, %p172_p9 }
   0xe   : > { %v541_v0 = vld [vmem:[%s781_s1] sm:$0xff] (!%p173_p10)   ;;  %v626_v1 = vmov (!%p173_p10), 0.0   ;;  %v542_v2 = vld [vmem:[%s781_s1 + $0x8] sm:$0xff] (!%p173_p10)   ;;  %vm627_vm0 = vmmov (!%p173_p10), 0   ;;  %s441_s30 = sshll.u32 (!%p173_p10), %s616_s15, 1  ;;  %v543_v3 = vld [vmem:[%s781_s1 + $0x10] sm:$0xff] (!%p173_p10)  }
   0xf   : > { %176 = sbr.rel (%p173_p10) target bundleno = 264 (0x108), region = 32  ;;  %470 = vmatprep.subr.bf16.mxu0 (!%p173_p10), %v626_v1  ;;  %478 = vmatprep.mubr.msk.bf16.mxu0 (!%p173_p10), %vm627_vm0, %v626_v1  ;;  %p204_p11 = scmp.lt.s32.totalorder (!%p173_p10), %s441_s30, 3  ;;  %v544_v4 = vld [vmem:[%s781_s1 + $0x18] sm:$0xff] (!%p173_p10)   ;;  %vm264_vm1 = vcmask (!%p173_p10), 523264   ;;  %v443_v6 = vld [vmem:[%s782_s2] ss:$0 sm:$0xff] (!%p173_p10) }
  0x10   : > { %471 = vmatpush3.bf16.msra.mxu0 (!%p173_p10), %v541_v0  ;;  %s200_s18 = sand.u32 (!%p173_p10), 1, %s608_s13   ;;  %s459_s28 = sshll.u32 (!%p173_p10), %s616_s15, 7 }
  0x11   : > { %472 = vmatprep.subr.bf16.mxu0 (!%p173_p10), %v626_v1  ;;  %s440_s19 = sshll.u32 (!%p173_p10), %s200_s18, 3  ;;  %s732_s4 = scalar_lea.hbm (!%p173_p10), %s783_s3, %s459_s28 }
  0x12   : > { %s202_s26 = scalar_lea.vmem (!%p173_p10), [#allocation2], %s440_s19  ;;  %s734_s5 = scalar_lea.sflag (!%p173_p10), [#allocation3], %s200_s18 }
  0x13   : > { %s334_s27 = sshll.u32 (!%p173_p10), %s202_s26, 4  ;;  %s628_s15 = smov (!%p173_p10), [#allocation2]   ;;  %s727_s27 = int_to_ptr.vmem [resolvable:$true] %s334_s27 }
  0x14   : > { %473 = vmatpush3.bf16.msra.mxu0 (!%p173_p10), %v542_v2  ;;  %s550_s7 = sshll.u32 (!%p173_p10), %s628_s15, 4  ;;  %s551_s7 = int_to_ptr.vmem [resolvable:$false] %s550_s7 }
  0x15   : > { %474 = vmatprep.subr.bf16.mxu0 (!%p173_p10), %v626_v1  ;;  %s552_s8 = scalar_lea.vmem (!%p173_p10), %s551_s7, 256  ;;  %p553_p1 = scmp.lt.s32.totalorder (!%p173_p10), %s727_s27, %s551_s7 }
  0x16   : > { %s794_s30 = smov (!%p204_p11, %s441_s30), 3 }
  0x17   : > { %s442_s6 = sshll.u32 %s794_s30, 2 }
  0x18   : > { %s207_s9 = scalar_lea.vmem %s780_s0, %s442_s6  ;;  %475 = vmatpush3.bf16.msra.mxu0 %v543_v3  ;;  %s546_s6 = scalar_lea.vmem %s727_s27, 128 }
  0x19   : > { %476 = vmatprep.subr.bf16.mxu0 %v626_v1  ;;  %v545_v5 = vld [vmem:[%s207_s9] sm:$0xff]   ;;  %p547_p12 = scmp.ne.s32.totalorder %s727_s27, %s546_s6  ;;  %p554_p2 = scmp.lt.s32.totalorder %s552_s8, %s546_s6 }
  0x1b   : > { %p548_p13 = pnand %p547_p12, %p691_p4  ;;  %p555_p3 = por %p554_p2, %p553_p1 }
  0x1c   : > { %477 = vmatpush3.bf16.msra.mxu0 %v544_v4 }
  0x1d   : > { %p549_p0 = pneg %p548_p13 }
  0x1f   : > { %479 = vmatmul.mubr.msk.bf16.vlgmr.msra.gmra.mrb[0].mxu0 %vm264_vm1, %v545_v5  ;;  %p556_p5 = pnand %p555_p3, %p549_p0 }
  0xf2   : > { %v302_v7 = vpop.f32.mrb[0].mxu0 }
  0xf3   : > { %v480_v8 = vpop.f32.mrb[1].mxu0  ;;  %v303_v10 = vadd.f32 %v443_v6, %v302_v7 }
  0xf4   : > { %v305_v9 = vpop.f32.mrb[2].mxu0 }
  0xf5   : > { %v306_v11 = vadd.f32 %v443_v6, %v305_v9  ;;  %v481_v12 = vpop.f32.mrb[3].mxu0 }
  0xf7   : > { %v463_v13 = vpack.c.bf16 %v306_v11, %v303_v10 }
  0xf9   : > { %464 = vst [vmem:[%s202_s26] sm:$0xff] %v463_v13  }
  0xfa   : > { %559 = shalt.err (!%p556_p5)
}
  0xfb   : > { %s560_s9 = scalar_lea.hbm %s732_s4, 128  ;;  %s564_s18 = scalar_lea.hbm %s783_s3, 256 }
  0xfc   : > { %p561_p6 = scmp.ne.s32.totalorder %s732_s4, %s560_s9  ;;  %p565_p10 = scmp.lt.u32.totalorder %s732_s4, %s783_s3 }
  0xfd   : > { %p566_p11 = scmp.lt.u32.totalorder %s564_s18, %s560_s9  ;;  %p568_p13 = scmp.lt.u32.totalorder %s560_s9, %s732_s4 }
  0xfe   : > { %p562_p7 = pnand %p561_p6, %p691_p4 }
  0xff   : > { %p567_p12 = por %p566_p11, %p565_p10 }
 0x100   : > { %p563_p9 = pneg %p562_p7 }
 0x101   : > { %p569_p0 = por %p568_p13, %p567_p12 }
 0x103   : > { %p570_p1 = pnand %p569_p0, %p563_p9 }
 0x105   : > { %573 = shalt.err (!%p570_p1)
}
 0x106   : > { %s629_s23 = smov 64   ;;  %s630_s26 = smov 4  }
 0x107   : > { %482 = dma.vmem_to_hbm [thread:$0]  (%p691_p4), %s727_s27, 128, %s732_s4, %s734_s5, %s629_s23, %s629_s23, %s630_s26  }
 0x108 PF: > { %p488_p2 = scmp.ge.s32.totalorder %s624_s17, 2  ;;  %s349_s28 = sand.u32 1, %s604_s12  }
 0x109   : > { %s350_s29 = scalar_lea.sflag [#allocation3], %s349_s28 }
 0x10a   : > { %p485_p3 = pnand %p488_p2, %p698_p8 }
 0x10c   : > { %599 = dma.done.wait (!%p485_p3), %s350_s29, 128  }
 0x10d   : > { %601 = vsyncadd (!%p485_p3), %s350_s29, 4294967168  ;;  %s16_s17 = sadd.s32 1, %s624_s17   ;;  %s786_s12 = smov %s608_s13 }
 0x10e   : > { %p13_p5 = scmp.ge.s32.totalorder %s16_s17, 4   ;;  %s787_s13 = smov %s612_s14 }
 0x10f   : > { %s788_s14 = smov %s704_s25  ;;  %s789_s15 = smov %s620_s16 }
 0x110   : > { %s790_s16 = smov %s792_s20  ;;  %15 = sbr.rel (!%p13_p5) target bundleno = 4 (0x4), region = 73 }
 0x117   :  { %355 = vsyncpa [#allocation3], 1 }
 0x118   :  { %357 = vsyncpa [#allocation3 + $0x1], 1 }

</bundles_post_ra>
